<compile_context>
chip_gen: v7x
topology: tpu7x:2x2x1
jax: 0.10.0
libtpu: 0.0.40
codegen_flags: <defaults>
</compile_context>

<pallas_src>
import numpy as np

import jax
import jax.numpy as jnp
from jax import lax
from jax.experimental import pallas as pl
from jax.experimental.pallas import tpu as pltpu


_SQRT_2_OVER_PI = 0.7978845608028654


def _gelu_tanh(x):
    """tanh-form GELU; the tanh lands on the otherwise-idle EUP slot."""
    return 0.5 * x * (1.0 + jnp.tanh(_SQRT_2_OVER_PI * (x + 0.044715 * (x * x * x))))


def _round_up(n, m):
    return ((n + m - 1) // m) * m


# ----------------------------------------------------------------------------
# Host-side prep: fused / folded / batch-folded parameters and depthwise masks
# ----------------------------------------------------------------------------
def _pack_params(params, Cin, Ccond, Cmid, hid, GB):
    """Fuse SFT branches, fold LayerNorm affine + SFT '+1', replicate block-diagonally over
    the GB batch elements folded per grid step, and pack everything into one f32 buffer
    whose blocks start on 8-row (sublane-aligned) boundaries.

    Returns (packed[rows, cols], offsets{name: (row, h, w)}).
    """
    C2 = 2 * hid
    f32 = jnp.float32

    w_sc0 = params["w_sc0"].astype(f32); b_sc0 = params["b_sc0"].astype(f32)
    w_sc1 = params["w_sc1"].astype(f32); b_sc1 = params["b_sc1"].astype(f32)
    w_sh0 = params["w_sh0"].astype(f32); b_sh0 = params["b_sh0"].astype(f32)
    w_sh1 = params["w_sh1"].astype(f32); b_sh1 = params["b_sh1"].astype(f32)
    ln_w = params["ln_w"].astype(f32);   ln_b = params["ln_b"].astype(f32)
    w_pi = params["w_pi"].astype(f32);   b_pi = params["b_pi"].astype(f32)
    w_dw = params["w_dw"].reshape(C2, 9).astype(f32)
    b_dw = params["b_dw"].astype(f32)
    w_po = params["w_po"].astype(f32);   b_po = params["b_po"].astype(f32)

    # --- fused SFT stage 1 (scale & shift branches share one dot), block-diag over GB ---
    wf1_g = jnp.concatenate([w_sc0, w_sh0], axis=0)                      # (2*Cmid, Ccond)
    bf1_g = jnp.concatenate([b_sc0, b_sh0])                              # (2*Cmid,)
    wf1 = jnp.zeros((GB * 2 * Cmid, GB * Ccond), f32)
    for g in range(GB):
        wf1 = wf1.at[g * 2 * Cmid:(g + 1) * 2 * Cmid,
                     g * Ccond:(g + 1) * Ccond].set(wf1_g)
    bf1 = jnp.tile(bf1_g, GB)[:, None]

    # --- fused SFT stage 2: output rows = [scale_g0..scale_g{GB-1}; shift_g0..]; '+1' folded ---
    wf2 = jnp.zeros((2 * GB * Cin, GB * 2 * Cmid), f32)
    for g in range(GB):
        wf2 = wf2.at[g * Cin:(g + 1) * Cin,
                     g * 2 * Cmid:g * 2 * Cmid + Cmid].set(w_sc1)
        wf2 = wf2.at[GB * Cin + g * Cin:GB * Cin + (g + 1) * Cin,
                     g * 2 * Cmid + Cmid:(g + 1) * 2 * Cmid].set(w_sh1)
    bf2 = jnp.concatenate([jnp.tile(b_sc1 + 1.0, GB), jnp.tile(b_sh1, GB)])[:, None]

    # --- project_in with LayerNorm affine folded; rows ordered [x1 of every group; x2 ...] ---
    w_pi_f = w_pi * ln_w[None, :]                                        # (C2, Cin)
    b_pi_f = b_pi + jnp.dot(w_pi, ln_b, precision=jax.lax.Precision.HIGHEST)
    w_pi_bd = jnp.zeros((GB * C2, GB * Cin), f32)
    for g in range(GB):
        w_pi_bd = w_pi_bd.at[g * hid:(g + 1) * hid,
                             g * Cin:(g + 1) * Cin].set(w_pi_f[:hid])
        w_pi_bd = w_pi_bd.at[GB * hid + g * hid:GB * hid + (g + 1) * hid,
                             g * Cin:(g + 1) * Cin].set(w_pi_f[hid:])
    b_pi_bd = jnp.concatenate([jnp.tile(b_pi_f[:hid], GB),
                               jnp.tile(b_pi_f[hid:], GB)])[:, None]

    # --- depthwise weights/bias in the same (x1-groups-first) row order ---
    w_dw_bd = jnp.concatenate([jnp.tile(w_dw[:hid], (GB, 1)),
                               jnp.tile(w_dw[hid:], (GB, 1))], axis=0)   # (GB*C2, 9)
    b_dw_bd = jnp.concatenate([jnp.tile(b_dw[:hid], GB),
                               jnp.tile(b_dw[hid:], GB)])[:, None]

    # --- project_out block-diag ---
    w_po_bd = jnp.zeros((GB * Cin, GB * hid), f32)
    for g in range(GB):
        w_po_bd = w_po_bd.at[g * Cin:(g + 1) * Cin, g * hid:(g + 1) * hid].set(w_po)
    b_po_bd = jnp.tile(b_po, GB)[:, None]

    blocks = [
        ("wf1", wf1), ("bf1", bf1), ("wf2", wf2), ("bf2", bf2),
        ("w_pi", w_pi_bd), ("b_pi", b_pi_bd),
        ("w_dw", w_dw_bd), ("b_dw", b_dw_bd),
        ("w_po", w_po_bd), ("b_po", b_po_bd),
    ]

    offs = {}
    row = 0
    width = max(a.shape[1] for _, a in blocks)
    for name, a in blocks:
        offs[name] = (row, a.shape[0], a.shape[1])
        row += _round_up(a.shape[0], 8)

    packed = jnp.zeros((row, width), f32)
    for name, a in blocks:
        r0, h, w = offs[name]
        packed = packed.at[r0:r0 + h, :w].set(a)
    return packed, offs


def _border_masks(H, W):
    """(4, H*W) f32 validity masks for the restructured depthwise 3x3 (zero padding):
    row0: c>=1 (dx=-1 term), row1: c<=W-2 (dx=+1), row2: r>=1 (dy=-1), row3: r<=H-2 (dy=+1)."""
    r = np.arange(H)[:, None]
    c = np.arange(W)[None, :]
    ones = np.ones((H, W), np.float32)
    cm_l = (c >= 1) * ones
    cm_r = (c <= W - 2) * ones
    rm_u = (r >= 1) * ones
    rm_d = (r <= H - 2) * ones
    m = np.stack([cm_l, cm_r, rm_u, rm_d]).astype(np.float32).reshape(4, H * W)
    return jnp.asarray(m)


# ----------------------------------------------------------------------------
# Pallas kernel: SFT layer + FeedForward (+ both residuals) for GB folded batch elements
# ----------------------------------------------------------------------------
def _make_kernel(H, W, Cin, Ccond, Cmid, hid, GB, offs, eps=1e-6):
    N = H * W
    GCin = GB * Cin
    Ghid = GB * hid

    def kernel(cont_ref, emb_ref, p_ref, m_ref, out_ref):
        cont = cont_ref[0]            # (GB*Cin, N)  channels (x GB) on sublanes, flat spatial on lanes
        emb = emb_ref[0]              # (GB*Ccond, N)

        def P(name):                  # static slice of the packed parameter buffer
            r0, h, w = offs[name]
            return p_ref[r0:r0 + h, 0:w]

        # ---- SFTLayer: fused 1x1 convs (scale & shift share each dot; block-diag over GB) ----
        h1 = jnp.dot(P("wf1"), emb, preferred_element_type=jnp.float32) + P("bf1")
        h1 = jnp.maximum(h1, 0.0)                                                   # (GB*2*Cmid, N)
        ss = jnp.dot(P("wf2"), h1, preferred_element_type=jnp.float32) + P("bf2")   # (2*GB*Cin, N)
        fea = cont * ss[:GCin] + ss[GCin:]     # '+1' already folded into the scale-row bias

        # ---- channels_first LayerNorm per folded batch element (affine folded into w_pi/b_pi) ----
        xs = []
        for g in range(GB):
            f_g = fea[g * Cin:(g + 1) * Cin]
            u = jnp.mean(f_g, axis=0, keepdims=True)
            d = f_g - u
            var = jnp.mean(d * d, axis=0, keepdims=True)
            xs.append(d * lax.rsqrt(var + eps))

        # ---- project_in (1x1 conv, ln affine folded); one small dot per folded element ----
        w_pi_all = P("w_pi")                                             # (GB*C2, GB*Cin) block-diag
        pj = jnp.dot(w_pi_all[:, 0:Cin], xs[0],
                     preferred_element_type=jnp.float32) + P("b_pi")
        for g in range(1, GB):
            pj = pj + jnp.dot(w_pi_all[:, g * Cin:(g + 1) * Cin], xs[g],
                              preferred_element_type=jnp.float32)        # (GB*C2, N)

        # ---- depthwise 3x3, padding=1, on the flattened (lane) spatial axis ----
        # 3 column-shifted/masked copies built once; per kernel row: 3-tap FMA + one +/-W roll
        # + one row mask.  Wrapped lanes of every roll are exactly the masked-out positions.
        w_dw = P("w_dw")                                                 # (GB*C2, 9)
        cm_l = m_ref[0:1, :]
        cm_r = m_ref[1:2, :]
        rm_u = m_ref[2:3, :]
        rm_d = m_ref[3:4, :]
        s_neg = pltpu.roll(pj, shift=1, axis=1) * cm_l                   # in[:, r, c-1]
        s_pos = pltpu.roll(pj, shift=N - 1, axis=1) * cm_r               # in[:, r, c+1]

        def row_combo(ky):                                               # sum over dx for row ky
            return (s_neg * w_dw[:, 3 * ky + 0:3 * ky + 1] +
                    pj    * w_dw[:, 3 * ky + 1:3 * ky + 2] +
                    s_pos * w_dw[:, 3 * ky + 2:3 * ky + 3])

        acc = row_combo(1)                                               # dy = 0
        acc = acc + pltpu.roll(row_combo(0), shift=W, axis=1) * rm_u     # dy = -1
        acc = acc + pltpu.roll(row_combo(2), shift=N - W, axis=1) * rm_d  # dy = +1
        acc = acc + P("b_dw")

        # ---- gating: gelu(x1) * x2  (torch .chunk(2, dim=1); x1 rows packed first) ----
        gact = _gelu_tanh(acc[:Ghid]) * acc[Ghid:]                       # (GB*hid, N)

        # ---- project_out (1x1 conv) + FFN residual + ResBlock residual ----
        po = jnp.dot(P("w_po"), gact, preferred_element_type=jnp.float32) + P("b_po")
        out_ref[0] = cont + po + fea

    return kernel


# ----------------------------------------------------------------------------
# Wrapper (NCHW in / NCHW out)
# ----------------------------------------------------------------------------
def resblock_sft_forward(cont_nchw, embed_nchw, params, k=1):
    assert k == 1, "only k=1 (identity interpolation) is supported"
    B, Cin, H, W = cont_nchw.shape
    Bc, Ccond, Hc, Wc = embed_nchw.shape
    assert (B, H, W) == (Bc, Hc, Wc)
    N = H * W
    hid = params["w_po"].shape[1]
    Cmid = params["w_sc0"].shape[0]

    # fold 2 batch elements per grid step when possible -> full 8-sublane occupancy
    GB = 2 if B % 2 == 0 else 1
    BG = B // GB

    # free reshapes: channel axes stay leading, spatial flattens onto the lane axis
    cont_f = cont_nchw.reshape(BG, GB * Cin, N).astype(jnp.float32)
    emb_f = embed_nchw.reshape(BG, GB * Ccond, N).astype(jnp.float32)

    packed, offs = _pack_params(params, Cin, Ccond, Cmid, hid, GB)
    masks = _border_masks(H, W)
    kernel = _make_kernel(H, W, Cin, Ccond, Cmid, hid, GB, offs)

    out_f = pl.pallas_call(
        kernel,
        out_shape=jax.ShapeDtypeStruct((BG, GB * Cin, N), jnp.float32),
        grid=(BG,),
        in_specs=[
            pl.BlockSpec((1, GB * Cin, N), lambda b: (b, 0, 0)),
            pl.BlockSpec((1, GB * Ccond, N), lambda b: (b, 0, 0)),
            pl.BlockSpec(packed.shape, lambda b: (0, 0)),
            pl.BlockSpec(masks.shape, lambda b: (0, 0)),
        ],
        out_specs=pl.BlockSpec((1, GB * Cin, N), lambda b: (b, 0, 0)),
        compiler_params=pltpu.CompilerParams(dimension_semantics=("parallel",)),
    )(cont_f, emb_f, packed, masks)

    return out_f.reshape(B, Cin, H, W), embed_nchw


# ----------------------------------------------------------------------------
# Pure-JAX reference (mirrors the PyTorch module, NCHW, lax.conv) for validation
# ----------------------------------------------------------------------------
def _conv1x1_nchw(x, w, b):
    y = lax.conv_general_dilated(x, w[:, :, None, None], (1, 1), "VALID",
                                 dimension_numbers=("NCHW", "OIHW", "NCHW"),
                                 precision=lax.Precision.HIGHEST)
    return y + b.reshape(1, -1, 1, 1)


def _dwconv3x3_nchw(x, w, b):
    C = x.shape[1]
    y = lax.conv_general_dilated(x, w[:, None, :, :], (1, 1), ((1, 1), (1, 1)),
                                 dimension_numbers=("NCHW", "OIHW", "NCHW"),
                                 feature_group_count=C,
                                 precision=lax.Precision.HIGHEST)
    return y + b.reshape(1, -1, 1, 1)


def resblock_sft_reference(cont, embed, params):
    s = jnp.maximum(_conv1x1_nchw(embed, params["w_sc0"], params["b_sc0"]), 0.0)
    scale = _conv1x1_nchw(s, params["w_sc1"], params["b_sc1"])
    t = jnp.maximum(_conv1x1_nchw(embed, params["w_sh0"], params["b_sh0"]), 0.0)
    shift = _conv1x1_nchw(t, params["w_sh1"], params["b_sh1"])
    fea = cont * (scale + 1.0) + shift

    u = jnp.mean(fea, axis=1, keepdims=True)
    var = jnp.mean((fea - u) ** 2, axis=1, keepdims=True)
    xn = (fea - u) / jnp.sqrt(var + 1e-6)
    xn = params["ln_w"].reshape(1, -1, 1, 1) * xn + params["ln_b"].reshape(1, -1, 1, 1)

    pj = _conv1x1_nchw(xn, params["w_pi"], params["b_pi"])
    dw = _dwconv3x3_nchw(pj, params["w_dw"], params["b_dw"])
    hid = params["w_po"].shape[1]
    x1, x2 = dw[:, :hid], dw[:, hid:]
    g = x1 * 0.5 * (1.0 + lax.erf(x1 / np.sqrt(2.0))) * x2
    po = _conv1x1_nchw(g, params["w_po"], params["b_po"])
    return cont + (po + fea), embed


# ----------------------------------------------------------------------------
if __name__ == "__main__":
    # ResBlock_SFT(in_ch=4, cond_ch=4, factor=1, k=1); FeedForward(dim=4, expansion=1)
    Cin, Ccond = 4, 4
    hid = Cin           # ffn_expansion_factor = 1
    C2 = 2 * hid
    Cmid = Ccond        # factor = 1

    key = jax.random.PRNGKey(0)
    ks = jax.random.split(key, 20)

    def nrm(k, shape, scale=0.2):
        return (scale * jax.random.normal(k, shape)).astype(jnp.float32)

    # weights stored in torch conv layout squeezed to (out_ch, in_ch) / (C, 3, 3)
    params = {
        "w_sc0": nrm(ks[0], (Cmid, Ccond)), "b_sc0": nrm(ks[1], (Cmid,), 0.05),
        "w_sc1": nrm(ks[2], (Cin, Cmid)),   "b_sc1": nrm(ks[3], (Cin,), 0.05),
        "w_sh0": nrm(ks[4], (Cmid, Ccond)), "b_sh0": nrm(ks[5], (Cmid,), 0.05),
        "w_sh1": nrm(ks[6], (Cin, Cmid)),   "b_sh1": nrm(ks[7], (Cin,), 0.05),
        "ln_w": (1.0 + 0.1 * jax.random.normal(ks[8], (Cin,))).astype(jnp.float32),
        "ln_b": nrm(ks[9], (Cin,), 0.05),
        "w_pi": nrm(ks[10], (C2, Cin)),     "b_pi": nrm(ks[11], (C2,), 0.05),
        "w_dw": nrm(ks[12], (C2, 3, 3)),    "b_dw": nrm(ks[13], (C2,), 0.05),
        "w_po": nrm(ks[14], (Cin, hid)),    "b_po": nrm(ks[15], (Cin,), 0.05),
    }

    # case 1: even batch -> 2 batch elements folded per grid step (full sublane occupancy)
    B, H, W = 2, 16, 16
    cont = jax.random.normal(ks[16], (B, Cin, H, W), dtype=jnp.float32)
    embed = jax.random.normal(ks[17], (B, Ccond, H, W), dtype=jnp.float32)
    out0, out1 = resblock_sft_forward(cont, embed, params, k=1)
    out0 = jax.block_until_ready(out0)
    ref0, _ = resblock_sft_reference(cont, embed, params)
    ref0 = jax.block_until_ready(ref0)
    err1 = float(jnp.max(jnp.abs(out0 - ref0)))
    assert err1 < 1e-2, f"case1 max abs error vs reference: {err1}"
    assert out0.shape == cont.shape and out1.shape == embed.shape

    # case 2: odd batch (GB=1 fallback) and H != W to exercise the flattened-spatial rolls
    B, H, W = 3, 8, 16
    cont = jax.random.normal(ks[18], (B, Cin, H, W), dtype=jnp.float32)
    embed = jax.random.normal(ks[19], (B, Ccond, H, W), dtype=jnp.float32)
    out0, _ = resblock_sft_forward(cont, embed, params, k=1)
    out0 = jax.block_until_ready(out0)
    ref0, _ = resblock_sft_reference(cont, embed, params)
    ref0 = jax.block_until_ready(ref0)
    err2 = float(jnp.max(jnp.abs(out0 - ref0)))
    assert err2 < 1e-2, f"case2 max abs error vs reference: {err2}"

    print("KERNEL_OK")
</pallas_src>

<mosaic_0001>
module attributes {stable_mosaic.version = 11 : i64} {
  func.func @kernel(%arg0: i32, %arg1: memref<1x8x256xf32, #tpu.memory_space<vmem>>, %arg2: memref<1x8x256xf32, #tpu.memory_space<vmem>>, %arg3: memref<144x16xf32, #tpu.memory_space<vmem>>, %arg4: memref<4x256xf32, #tpu.memory_space<vmem>>, %arg5: memref<1x8x256xf32, #tpu.memory_space<vmem>>) attributes {dimension_semantics = [#tpu.dimension_semantics<parallel>], iteration_bounds = array<i64: 1>, scalar_prefetch = 0 : i64, scratch_operands = 0 : i64, tpu.core_type = #tpu.core_type<tc>, window_params = [{transform_indices = @transform_0, window_bounds = array<i64: 1, 8, 256>}, {transform_indices = @transform_1, window_bounds = array<i64: 1, 8, 256>}, {pipeline_mode = #tpu.pipeline_mode<synchronous>, transform_indices = @transform_2, window_bounds = array<i64: 144, 16>}, {pipeline_mode = #tpu.pipeline_mode<synchronous>, transform_indices = @transform_3, window_bounds = array<i64: 4, 256>}, {transform_indices = @transform_4, window_bounds = array<i64: 1, 8, 256>}]} {
    %c0 = arith.constant 0 : index
    %c0_0 = arith.constant 0 : index
    %c0_1 = arith.constant 0 : index
    %0 = vector.load %arg1[%c0, %c0_0, %c0_1] : memref<1x8x256xf32, #tpu.memory_space<vmem>>, vector<1x8x256xf32>
    %1 = vector.shape_cast %0 : vector<1x8x256xf32> to vector<8x256xf32>
    %c0_2 = arith.constant 0 : index
    %c0_3 = arith.constant 0 : index
    %c0_4 = arith.constant 0 : index
    %2 = vector.load %arg2[%c0_2, %c0_3, %c0_4] : memref<1x8x256xf32, #tpu.memory_space<vmem>>, vector<1x8x256xf32>
    %3 = vector.shape_cast %2 : vector<1x8x256xf32> to vector<8x256xf32>
    %c0_5 = arith.constant 0 : index
    %c0_6 = arith.constant 0 : index
    %4 = vector.load %arg3[%c0_5, %c0_6] : memref<144x16xf32, #tpu.memory_space<vmem>>, vector<16x8xf32>
    %cst = arith.constant dense<0.000000e+00> : vector<16x256xf32>
    %5 = tpu.matmul %4, %3, %cst {dimension_numbers = #tpu.dot_dimension_numbers<[1], [0], [0], [1], [0, 0, 1, 1], [], []>} : vector<16x8xf32>, vector<8x256xf32>, vector<16x256xf32> -> vector<16x256xf32>
    %c16 = arith.constant 16 : index
    %c0_7 = arith.constant 0 : index
    %6 = vector.load %arg3[%c16, %c0_7] : memref<144x16xf32, #tpu.memory_space<vmem>>, vector<16x1xf32>
    %7 = vector.broadcast %6 : vector<16x1xf32> to vector<16x256xf32>
    %8 = arith.addf %5, %7 : vector<16x256xf32>
    %cst_8 = arith.constant 0.000000e+00 : f32
    %9 = vector.broadcast %cst_8 : f32 to vector<16x256xf32>
    %10 = arith.maximumf %8, %9 : vector<16x256xf32>
    %c32 = arith.constant 32 : index
    %c0_9 = arith.constant 0 : index
    %11 = vector.load %arg3[%c32, %c0_9] : memref<144x16xf32, #tpu.memory_space<vmem>>, vector<16x16xf32>
    %cst_10 = arith.constant dense<0.000000e+00> : vector<16x256xf32>
    %12 = tpu.matmul %11, %10, %cst_10 {dimension_numbers = #tpu.dot_dimension_numbers<[1], [0], [0], [1], [0, 0, 1, 1], [], []>} : vector<16x16xf32>, vector<16x256xf32>, vector<16x256xf32> -> vector<16x256xf32>
    %c48 = arith.constant 48 : index
    %c0_11 = arith.constant 0 : index
    %13 = vector.load %arg3[%c48, %c0_11] : memref<144x16xf32, #tpu.memory_space<vmem>>, vector<16x1xf32>
    %14 = vector.broadcast %13 : vector<16x1xf32> to vector<16x256xf32>
    %15 = arith.addf %12, %14 : vector<16x256xf32>
    %16 = vector.extract_strided_slice %15 {offsets = [0, 0], sizes = [8, 256], strides = [1, 1]} : vector<16x256xf32> to vector<8x256xf32>
    %17 = arith.mulf %1, %16 : vector<8x256xf32>
    %18 = vector.extract_strided_slice %15 {offsets = [8, 0], sizes = [8, 256], strides = [1, 1]} : vector<16x256xf32> to vector<8x256xf32>
    %19 = arith.addf %17, %18 : vector<8x256xf32>
    %20 = vector.extract_strided_slice %19 {offsets = [0, 0], sizes = [4, 256], strides = [1, 1]} : vector<8x256xf32> to vector<4x256xf32>
    %cst_12 = arith.constant dense<0.000000e+00> : vector<256xf32>
    %21 = vector.multi_reduction <add>, %20, %cst_12 [0] : vector<4x256xf32> to vector<256xf32>
    %22 = vector.shape_cast %21 : vector<256xf32> to vector<1x256xf32>
    %cst_13 = arith.constant 4.000000e+00 : f32
    %23 = vector.broadcast %cst_13 : f32 to vector<1x256xf32>
    %24 = arith.divf %22, %23 : vector<1x256xf32>
    %25 = vector.broadcast %24 : vector<1x256xf32> to vector<4x256xf32>
    %26 = arith.subf %20, %25 : vector<4x256xf32>
    %27 = arith.mulf %26, %26 : vector<4x256xf32>
    %cst_14 = arith.constant dense<0.000000e+00> : vector<256xf32>
    %28 = vector.multi_reduction <add>, %27, %cst_14 [0] : vector<4x256xf32> to vector<256xf32>
    %29 = vector.shape_cast %28 : vector<256xf32> to vector<1x256xf32>
    %cst_15 = arith.constant 4.000000e+00 : f32
    %30 = vector.broadcast %cst_15 : f32 to vector<1x256xf32>
    %31 = arith.divf %29, %30 : vector<1x256xf32>
    %cst_16 = arith.constant 9.99999997E-7 : f32
    %32 = vector.broadcast %cst_16 : f32 to vector<1x256xf32>
    %33 = arith.addf %31, %32 : vector<1x256xf32>
    %34 = math.rsqrt %33 : vector<1x256xf32>
    %35 = vector.broadcast %34 : vector<1x256xf32> to vector<4x256xf32>
    %36 = arith.mulf %26, %35 : vector<4x256xf32>
    %37 = vector.extract_strided_slice %19 {offsets = [4, 0], sizes = [4, 256], strides = [1, 1]} : vector<8x256xf32> to vector<4x256xf32>
    %cst_17 = arith.constant dense<0.000000e+00> : vector<256xf32>
    %38 = vector.multi_reduction <add>, %37, %cst_17 [0] : vector<4x256xf32> to vector<256xf32>
    %39 = vector.shape_cast %38 : vector<256xf32> to vector<1x256xf32>
    %cst_18 = arith.constant 4.000000e+00 : f32
    %40 = vector.broadcast %cst_18 : f32 to vector<1x256xf32>
    %41 = arith.divf %39, %40 : vector<1x256xf32>
    %42 = vector.broadcast %41 : vector<1x256xf32> to vector<4x256xf32>
    %43 = arith.subf %37, %42 : vector<4x256xf32>
    %44 = arith.mulf %43, %43 : vector<4x256xf32>
    %cst_19 = arith.constant dense<0.000000e+00> : vector<256xf32>
    %45 = vector.multi_reduction <add>, %44, %cst_19 [0] : vector<4x256xf32> to vector<256xf32>
    %46 = vector.shape_cast %45 : vector<256xf32> to vector<1x256xf32>
    %cst_20 = arith.constant 4.000000e+00 : f32
    %47 = vector.broadcast %cst_20 : f32 to vector<1x256xf32>
    %48 = arith.divf %46, %47 : vector<1x256xf32>
    %cst_21 = arith.constant 9.99999997E-7 : f32
    %49 = vector.broadcast %cst_21 : f32 to vector<1x256xf32>
    %50 = arith.addf %48, %49 : vector<1x256xf32>
    %51 = math.rsqrt %50 : vector<1x256xf32>
    %52 = vector.broadcast %51 : vector<1x256xf32> to vector<4x256xf32>
    %53 = arith.mulf %43, %52 : vector<4x256xf32>
    %c64 = arith.constant 64 : index
    %c0_22 = arith.constant 0 : index
    %54 = vector.load %arg3[%c64, %c0_22] : memref<144x16xf32, #tpu.memory_space<vmem>>, vector<16x8xf32>
    %55 = vector.extract_strided_slice %54 {offsets = [0, 0], sizes = [16, 4], strides = [1, 1]} : vector<16x8xf32> to vector<16x4xf32>
    %cst_23 = arith.constant dense<0.000000e+00> : vector<16x256xf32>
    %56 = tpu.matmul %55, %36, %cst_23 {dimension_numbers = #tpu.dot_dimension_numbers<[1], [0], [0], [1], [0, 0, 1, 1], [], []>} : vector<16x4xf32>, vector<4x256xf32>, vector<16x256xf32> -> vector<16x256xf32>
    %c80 = arith.constant 80 : index
    %c0_24 = arith.constant 0 : index
    %57 = vector.load %arg3[%c80, %c0_24] : memref<144x16xf32, #tpu.memory_space<vmem>>, vector<16x1xf32>
    %58 = vector.broadcast %57 : vector<16x1xf32> to vector<16x256xf32>
    %59 = arith.addf %56, %58 : vector<16x256xf32>
    %60 = vector.extract_strided_slice %54 {offsets = [0, 4], sizes = [16, 4], strides = [1, 1]} : vector<16x8xf32> to vector<16x4xf32>
    %cst_25 = arith.constant dense<0.000000e+00> : vector<16x256xf32>
    %61 = tpu.matmul %60, %53, %cst_25 {dimension_numbers = #tpu.dot_dimension_numbers<[1], [0], [0], [1], [0, 0, 1, 1], [], []>} : vector<16x4xf32>, vector<4x256xf32>, vector<16x256xf32> -> vector<16x256xf32>
    %62 = arith.addf %59, %61 : vector<16x256xf32>
    %c96 = arith.constant 96 : index
    %c0_26 = arith.constant 0 : index
    %63 = vector.load %arg3[%c96, %c0_26] : memref<144x16xf32, #tpu.memory_space<vmem>>, vector<16x9xf32>
    %c0_27 = arith.constant 0 : index
    %c0_28 = arith.constant 0 : index
    %64 = vector.load %arg4[%c0_27, %c0_28] : memref<4x256xf32, #tpu.memory_space<vmem>>, vector<1x256xf32>
    %c1 = arith.constant 1 : index
    %c0_29 = arith.constant 0 : index
    %65 = vector.load %arg4[%c1, %c0_29] : memref<4x256xf32, #tpu.memory_space<vmem>>, vector<1x256xf32>
    %c2 = arith.constant 2 : index
    %c0_30 = arith.constant 0 : index
    %66 = vector.load %arg4[%c2, %c0_30] : memref<4x256xf32, #tpu.memory_space<vmem>>, vector<1x256xf32>
    %c3 = arith.constant 3 : index
    %c0_31 = arith.constant 0 : index
    %67 = vector.load %arg4[%c3, %c0_31] : memref<4x256xf32, #tpu.memory_space<vmem>>, vector<1x256xf32>
    %c1_i32 = arith.constant 1 : i32
    %68 = tpu.dynamic_rotate %62 by %c1_i32 dim 1 : vector<16x256xf32>, i32 -> vector<16x256xf32>
    %69 = vector.broadcast %64 : vector<1x256xf32> to vector<16x256xf32>
    %70 = arith.mulf %68, %69 : vector<16x256xf32>
    %c255_i32 = arith.constant 255 : i32
    %71 = tpu.dynamic_rotate %62 by %c255_i32 dim 1 : vector<16x256xf32>, i32 -> vector<16x256xf32>
    %72 = vector.broadcast %65 : vector<1x256xf32> to vector<16x256xf32>
    %73 = arith.mulf %71, %72 : vector<16x256xf32>
    %74 = vector.extract_strided_slice %63 {offsets = [0, 3], sizes = [16, 1], strides = [1, 1]} : vector<16x9xf32> to vector<16x1xf32>
    %75 = vector.broadcast %74 : vector<16x1xf32> to vector<16x256xf32>
    %76 = arith.mulf %70, %75 : vector<16x256xf32>
    %77 = vector.extract_strided_slice %63 {offsets = [0, 4], sizes = [16, 1], strides = [1, 1]} : vector<16x9xf32> to vector<16x1xf32>
    %78 = vector.broadcast %77 : vector<16x1xf32> to vector<16x256xf32>
    %79 = arith.mulf %62, %78 : vector<16x256xf32>
    %80 = arith.addf %76, %79 : vector<16x256xf32>
    %81 = vector.extract_strided_slice %63 {offsets = [0, 5], sizes = [16, 1], strides = [1, 1]} : vector<16x9xf32> to vector<16x1xf32>
    %82 = vector.broadcast %81 : vector<16x1xf32> to vector<16x256xf32>
    %83 = arith.mulf %73, %82 : vector<16x256xf32>
    %84 = arith.addf %80, %83 : vector<16x256xf32>
    %85 = vector.extract_strided_slice %63 {offsets = [0, 0], sizes = [16, 1], strides = [1, 1]} : vector<16x9xf32> to vector<16x1xf32>
    %86 = vector.broadcast %85 : vector<16x1xf32> to vector<16x256xf32>
    %87 = arith.mulf %70, %86 : vector<16x256xf32>
    %88 = vector.extract_strided_slice %63 {offsets = [0, 1], sizes = [16, 1], strides = [1, 1]} : vector<16x9xf32> to vector<16x1xf32>
    %89 = vector.broadcast %88 : vector<16x1xf32> to vector<16x256xf32>
    %90 = arith.mulf %62, %89 : vector<16x256xf32>
    %91 = arith.addf %87, %90 : vector<16x256xf32>
    %92 = vector.extract_strided_slice %63 {offsets = [0, 2], sizes = [16, 1], strides = [1, 1]} : vector<16x9xf32> to vector<16x1xf32>
    %93 = vector.broadcast %92 : vector<16x1xf32> to vector<16x256xf32>
    %94 = arith.mulf %73, %93 : vector<16x256xf32>
    %95 = arith.addf %91, %94 : vector<16x256xf32>
    %c16_i32 = arith.constant 16 : i32
    %96 = tpu.dynamic_rotate %95 by %c16_i32 dim 1 : vector<16x256xf32>, i32 -> vector<16x256xf32>
    %97 = vector.broadcast %66 : vector<1x256xf32> to vector<16x256xf32>
    %98 = arith.mulf %96, %97 : vector<16x256xf32>
    %99 = arith.addf %84, %98 : vector<16x256xf32>
    %100 = vector.extract_strided_slice %63 {offsets = [0, 6], sizes = [16, 1], strides = [1, 1]} : vector<16x9xf32> to vector<16x1xf32>
    %101 = vector.broadcast %100 : vector<16x1xf32> to vector<16x256xf32>
    %102 = arith.mulf %70, %101 : vector<16x256xf32>
    %103 = vector.extract_strided_slice %63 {offsets = [0, 7], sizes = [16, 1], strides = [1, 1]} : vector<16x9xf32> to vector<16x1xf32>
    %104 = vector.broadcast %103 : vector<16x1xf32> to vector<16x256xf32>
    %105 = arith.mulf %62, %104 : vector<16x256xf32>
    %106 = arith.addf %102, %105 : vector<16x256xf32>
    %107 = vector.extract_strided_slice %63 {offsets = [0, 8], sizes = [16, 1], strides = [1, 1]} : vector<16x9xf32> to vector<16x1xf32>
    %108 = vector.broadcast %107 : vector<16x1xf32> to vector<16x256xf32>
    %109 = arith.mulf %73, %108 : vector<16x256xf32>
    %110 = arith.addf %106, %109 : vector<16x256xf32>
    %c240_i32 = arith.constant 240 : i32
    %111 = tpu.dynamic_rotate %110 by %c240_i32 dim 1 : vector<16x256xf32>, i32 -> vector<16x256xf32>
    %112 = vector.broadcast %67 : vector<1x256xf32> to vector<16x256xf32>
    %113 = arith.mulf %111, %112 : vector<16x256xf32>
    %114 = arith.addf %99, %113 : vector<16x256xf32>
    %c112 = arith.constant 112 : index
    %c0_32 = arith.constant 0 : index
    %115 = vector.load %arg3[%c112, %c0_32] : memref<144x16xf32, #tpu.memory_space<vmem>>, vector<16x1xf32>
    %116 = vector.broadcast %115 : vector<16x1xf32> to vector<16x256xf32>
    %117 = arith.addf %114, %116 : vector<16x256xf32>
    %118 = vector.extract_strided_slice %117 {offsets = [0, 0], sizes = [8, 256], strides = [1, 1]} : vector<16x256xf32> to vector<8x256xf32>
    %cst_33 = arith.constant 5.000000e-01 : f32
    %119 = vector.broadcast %cst_33 : f32 to vector<8x256xf32>
    %120 = arith.mulf %119, %118 : vector<8x256xf32>
    %121 = arith.mulf %118, %118 : vector<8x256xf32>
    %122 = arith.mulf %121, %118 : vector<8x256xf32>
    %cst_34 = arith.constant 4.471500e-02 : f32
    %123 = vector.broadcast %cst_34 : f32 to vector<8x256xf32>
    %124 = arith.mulf %123, %122 : vector<8x256xf32>
    %125 = arith.addf %118, %124 : vector<8x256xf32>
    %cst_35 = arith.constant 0.797884583 : f32
    %126 = vector.broadcast %cst_35 : f32 to vector<8x256xf32>
    %127 = arith.mulf %126, %125 : vector<8x256xf32>
    %128 = math.tanh %127 : vector<8x256xf32>
    %cst_36 = arith.constant 1.000000e+00 : f32
    %129 = vector.broadcast %cst_36 : f32 to vector<8x256xf32>
    %130 = arith.addf %129, %128 : vector<8x256xf32>
    %131 = arith.mulf %120, %130 : vector<8x256xf32>
    %132 = vector.extract_strided_slice %117 {offsets = [8, 0], sizes = [8, 256], strides = [1, 1]} : vector<16x256xf32> to vector<8x256xf32>
    %133 = arith.mulf %131, %132 : vector<8x256xf32>
    %c128 = arith.constant 128 : index
    %c0_37 = arith.constant 0 : index
    %134 = vector.load %arg3[%c128, %c0_37] : memref<144x16xf32, #tpu.memory_space<vmem>>, vector<8x8xf32>
    %cst_38 = arith.constant dense<0.000000e+00> : vector<8x256xf32>
    %135 = tpu.matmul %134, %133, %cst_38 {dimension_numbers = #tpu.dot_dimension_numbers<[1], [0], [0], [1], [0, 0, 1, 1], [], []>} : vector<8x8xf32>, vector<8x256xf32>, vector<8x256xf32> -> vector<8x256xf32>
    %c136 = arith.constant 136 : index
    %c0_39 = arith.constant 0 : index
    %136 = vector.load %arg3[%c136, %c0_39] : memref<144x16xf32, #tpu.memory_space<vmem>>, vector<8x1xf32>
    %137 = vector.broadcast %136 : vector<8x1xf32> to vector<8x256xf32>
    %138 = arith.addf %135, %137 : vector<8x256xf32>
    %139 = arith.addf %1, %138 : vector<8x256xf32>
    %140 = arith.addf %139, %19 : vector<8x256xf32>
    %c0_40 = arith.constant 0 : index
    %c0_41 = arith.constant 0 : index
    %c0_42 = arith.constant 0 : index
    %141 = vector.load %arg5[%c0_40, %c0_41, %c0_42] : memref<1x8x256xf32, #tpu.memory_space<vmem>>, vector<1x8x256xf32>
    %142 = vector.shape_cast %141 : vector<1x8x256xf32> to vector<8x256xf32>
    %143 = vector.shape_cast %140 : vector<8x256xf32> to vector<1x8x256xf32>
    tpu.vector_store %arg5[%c0_40, %c0_41, %c0_42], %143 {strides = array<i32>} : memref<1x8x256xf32, #tpu.memory_space<vmem>>, vector<1x8x256xf32>,
    return
  }
  func.func @transform_0(%arg0: i32) -> (i32, i32, i32) {
    %c0_i32 = arith.constant 0 : i32
    %c0_i32_0 = arith.constant 0 : i32
    %c0_i32_1 = arith.constant 0 : i32
    return %arg0, %c0_i32, %c0_i32_0 : i32, i32, i32
  }
  func.func @transform_1(%arg0: i32) -> (i32, i32, i32) {
    %c0_i32 = arith.constant 0 : i32
    %c0_i32_0 = arith.constant 0 : i32
    %c0_i32_1 = arith.constant 0 : i32
    return %arg0, %c0_i32, %c0_i32_0 : i32, i32, i32
  }
  func.func @transform_2(%arg0: i32) -> (i32, i32) {
    %c0_i32 = arith.constant 0 : i32
    %c0_i32_0 = arith.constant 0 : i32
    %c0_i32_1 = arith.constant 0 : i32
    return %c0_i32, %c0_i32_0 : i32, i32
  }
  func.func @transform_3(%arg0: i32) -> (i32, i32) {
    %c0_i32 = arith.constant 0 : i32
    %c0_i32_0 = arith.constant 0 : i32
    %c0_i32_1 = arith.constant 0 : i32
    return %c0_i32, %c0_i32_0 : i32, i32
  }
  func.func @transform_4(%arg0: i32) -> (i32, i32, i32) {
    %c0_i32 = arith.constant 0 : i32
    %c0_i32_0 = arith.constant 0 : i32
    %c0_i32_1 = arith.constant 0 : i32
    return %arg0, %c0_i32, %c0_i32_0 : i32, i32, i32
  }
}

</mosaic_0001>

<bundles_post_ra>
// kernel: tpu_custom_call.1
= control target key start
LH: loop header
LB: loop body
LE: loop exit
PB: predicated region body
PF: predicated region fallthrough
CT: control target
= control target key end

     0   :  { %vm36_vm0 = vcmask 64512   ;;  %v1028_v3 = vmov 0.0   ;;  %v1029_v5 = vmov 0   ;;  %s1388_s0 = inlined_call_operand.vmem [shape: f32[1,8,256], index: 0, kind: input, shape index: {}]   ;;  %s1389_s1 = inlined_call_operand.vmem [shape: f32[1,8,256], index: 1, kind: input, shape index: {}]   ;;  %s1390_s2 = inlined_call_operand.vmem [shape: f32[144,16], index: 2, kind: input, shape index: {}]   ;;  %s1391_s3 = inlined_call_operand.vmem [shape: f32[4,256], index: 3, kind: input, shape index: {}]   ;;  %s1392_s4 = inlined_call_operand.hbm [shape: f32[1,8,256], index: 4, kind: output, shape index: {}]  }
   0x1   :  { %v21_v0 = vld [vmem:[%s1389_s1 + $0x8] sm:$0xff]  ;;  %v20_v1 = vld [vmem:[%s1389_s1] sm:$0xff]  ;;  %107 = vmatprep.mubr.f32.mxu1 %v1028_v3  ;;  %v24_v4 = vld [vmem:[%s1390_s2 + $0x10] sm:$0xff]  ;;  %971 = vset.pattern.permute.xlu0 %v1029_v5 }
   0x2   :  { %v22_v2 = vld [vmem:[%s1390_s2] sm:$0xff]  ;;  %43 = vmatprep.subr.mxu1 %v21_v0  ;;  %28 = vperm.xlu0 %971, %v24_v4  }
   0x3   :  { %44 = vmatpush1.msra.mxu1 %v20_v1 }
   0x4   :  { %927 = vmatmul.mubr.msk.f32.vlgmr.msra.gmra.mrb[0].mxu1 %vm36_vm0, %v22_v2 }
   0x5   :  { %9 = vsyncpa [#allocation3], 0  ;;  %113 = vmatprep.mubr.f32.mxu1 %v1028_v3  ;;  %v23_v6 = vld [vmem:[%s1390_s2 + $0x8] sm:$0xff]  ;;  %v25_v7 = vld [vmem:[%s1390_s2 + $0x18] sm:$0xff]  ;;  %972 = vset.pattern.permute.xlu1 %v1029_v5  ;;  %s1030_s28 = smov 124   ;;  %vm138_vm1 = vcmask 130048  }
   0x6   :  { %415 = vmatprep.mubr.f32.mxu0 %v1028_v3  ;;  %33 = vperm.xlu0 %971, %v25_v7   ;;  %v1097_v8 = vld [vmem:[%s1390_s2 + $0x40] sm:$0xff]  ;;  %v326_v9 = vld [vmem:[%s1390_s2 + $0x50] sm:$0xff]  ;;  %v127_v12 = vld [vmem:[%s1390_s2 + $0x38] sm:$0xff]  ;;  %v1031_v33 = vmov 1   ;;  %v1032_v34 = vmov 2   ;;  %v1033_v35 = vmov 6  }
   0x7   :  { %v1107_v10 = vld [vmem:[%s1390_s2 + $0x60] sm:$0xff]  ;;  %v126_v11 = vld [vmem:[%s1390_s2 + $0x30] sm:$0xff]  ;;  %v1119_v13 = vld [vmem:[%s1390_s2 + $0x48] sm:$0xff]  ;;  %v1034_v36 = vmov 7   ;;  %vm226_vm2 = vcmask 1043456   ;;  %vm338_vm3 = vcmask 31744  }
   0x8   :  { %928 = vmatmul.mubr.msk.f32.gmra.mrb[2].mxu1 %vm36_vm0, %v23_v6  ;;  %130 = vperm.xlu1 %972, %v126_v11   ;;  %v327_v14 = vld [vmem:[%s1390_s2 + $0x58] sm:$0xff]  ;;  %v124_v31 = vld [vmem:[%s1390_s2 + $0x20] sm:$0xff]  ;;  %v125_v32 = vld [vmem:[%s1390_s2 + $0x28] sm:$0xff]  ;;  %s1037_s1 = smov 1   ;;  %s1041_s29 = smov 16  }
   0x9   :  { %209 = vmatprep.mubr.f32.mxu1 %v1028_v3  ;;  %v1143_v41 = vld [vmem:[%s1388_s0] sm:$0xff]  ;;  %v1148_v43 = vld [vmem:[%s1388_s0 + $0x8] sm:$0xff]  ;;  %s1036_s0 = smov 127   ;;  %s1042_s6 = smov 112  }
   0xa   :  { %428 = vrot.lane.b32.xlu0 %v1097_v8, %s1030_s28  ;;  %s1043_s16 = smov [#allocation2]  }
   0xb   :  { %s919_s17 = sshll.u32 %s1043_s16, 4  ;;  %s920_s17 = int_to_ptr.vmem [resolvable:$true] %s919_s17 }
   0xc   :  { %135 = vperm.xlu1 %972, %v127_v12   ;;  %p1009_p1 = scmp.lt.s32.totalorder %s920_s17, %s920_s17 }
   0xe   :  { %330 = vperm.xlu0 %971, %v326_v9  }
  0x10   :  { %430 = vrot.lane.b32.xlu1 %v1119_v13, %s1030_s28 }
  0x12   :  { %639 = vperm.xlu0 %971, %v1107_v10  }
  0x14   :  { %335 = vperm.xlu1 %972, %v327_v14  }
  0x16   :  { %974 = vset.pattern.permute.xlu0 %v1032_v34 }
  0x17   :  { %667 = vperm.xlu0 %974, %v1107_v10  }
  0x18   :  { %973 = vset.pattern.permute.xlu1 %v1031_v33 }
  0x19   :  { %651 = vperm.xlu1 %973, %v1107_v10  }
  0x1d   :  { %975 = vset.pattern.permute.xlu1 %v1033_v35 }
  0x1e   :  { %715 = vperm.xlu1 %975, %v1107_v10  }
  0x22   :  { %976 = vset.pattern.permute.xlu1 %v1034_v36 }
  0x23   :  { %727 = vperm.xlu1 %976, %v1107_v10  }
  0x27   :  { %979 = vset.pattern.permute.xlu1 %v1031_v33 }
  0x81   :  { %v29_v15 = vpop.permute.xlu0 %28 }
  0x85   :  { %v34_v19 = vpop.permute.xlu0 %33 }
  0x87   :  { %v131_v37 = vpop.permute.xlu1 %130 }
  0x8b   :  { %v136_v44 = vpop.permute.xlu1 %135 }
  0xd7   :  { %v109_v16 = vpop.f32.mrb[0].mxu1 }
  0xd8   :  { %v111_v17 = vpop.f32.mrb[1].mxu1  ;;  %v110_v18 = vadd.f32 %v109_v16, %v29_v15 }
  0xd9   :  { %v112_v20 = vadd.f32 %v111_v17, %v29_v15 }
  0xda   :  { %v120_v25 = vmax.f32 %v110_v18, 0.0 }
  0xdb   :  { %v115_v21 = vpop.f32.mrb[2].mxu1  ;;  %v121_v27 = vmax.f32 %v112_v20, 0.0 }
  0xdc   :  { %v116_v22 = vadd.f32 %v115_v21, %v34_v19  ;;  %v117_v23 = vpop.f32.mrb[3].mxu1 }
  0xdd   :  { %v118_v24 = vadd.f32 %v117_v23, %v34_v19 }
  0xde   :  { %v122_v26 = vmax.f32 %v116_v22, 0.0 }
  0xdf   :  { %v123_v28 = vmax.f32 %v118_v24, 0.0 }
  0xe0   :  { %v945_v29 = vpack.c.bf16 %v122_v26, %v120_v25 }
  0xe1   :  { %v943_v30 = vpack.c.bf16 %v123_v28, %v121_v27 }
  0xe3   :  { %944 = vmatprep.subr.bf16.mxu1 %v943_v30 }
  0xe4   :  { %946 = vmatpush1.bf16.msra.mxu1 %v945_v29 }
  0xe7   :  { %929 = vmatmul.mubr.msk.f32.vlgmr.msra.gmra.mrb[4].mxu1 %vm138_vm1, %v124_v31 }
  0xe8   :  { %215 = vmatprep.mubr.f32.mxu1 %v1028_v3 }
  0xeb   :  { %930 = vmatmul.mubr.msk.f32.gmra.mrb[6].mxu1 %vm138_vm1, %v125_v32 }
  0xec   :  { %900 = vmatprep.mubr.f32.mxu1 %v1028_v3 }
 0x1ba   :  { %v211_v38 = vpop.f32.mrb[4].mxu1 }
 0x1bb   :  { %v212_v39 = vadd.f32 %v211_v38, %v131_v37  ;;  %v213_v40 = vpop.f32.mrb[5].mxu1 }
 0x1bc   :  { %v214_v42 = vadd.f32 %v213_v40, %v131_v37 }
 0x1bd   :  { %v222_v46 = vmul.f32 %v212_v39, %v1143_v41 }
 0x1be   :  { %v217_v45 = vpop.f32.mrb[6].mxu1  ;;  %v223_v49 = vmul.f32 %v214_v42, %v1148_v43 }
 0x1bf   :  { %v218_v47 = vadd.f32 %v217_v45, %v136_v44  ;;  %v219_v48 = vpop.f32.mrb[7].mxu1 }
 0x1c0   :  { %v220_v50 = vadd.f32 %v219_v48, %v136_v44 }
 0x1c1   :  { %v1152_v51 = vadd.f32 %v222_v46, %v218_v47 }
 0x1c2   :  { %v1154_v52 = vadd.f32 %v223_v49, %v220_v50 }
 0x1c3   :  { %v272_v53 = vrot.slane %v1152_v51, 4  ;;  %v227_v54 = vsel %vm226_vm2, %v1152_v51, 0.0 }
 0x1c4   :  { %v273_v55 = vrot.slane %v1154_v52, 4  ;;  %v234_v56 = vsel %vm226_vm2, %v1154_v52, 0.0  ;;  %v228_v57 = vrot.slane %v227_v54, 4 }
 0x1c5   :  { %v276_v58 = vsel %vm226_vm2, %v272_v53, 0.0  ;;  %v235_v59 = vrot.slane %v234_v56, 4 }
 0x1c6   :  { %v277_v60 = vrot.slane %v276_v58, 4  ;;  %v283_v61 = vsel %vm226_vm2, %v273_v55, 0.0  ;;  %v229_v62 = vadd.f32 %v228_v57, %v227_v54 }
 0x1c7   :  { %v284_v63 = vrot.slane %v283_v61, 4  ;;  %v236_v0 = vadd.f32 %v235_v59, %v234_v56 }
 0x1c8   :  { %v278_v1 = vadd.f32 %v277_v60, %v276_v58  ;;  %v230_v2 = vrot.slane %v229_v62, 2 }
 0x1c9   :  { %v237_v4 = vrot.slane %v236_v0, 2  ;;  %v285_v6 = vadd.f32 %v284_v63, %v283_v61 }
 0x1ca   :  { %v279_v7 = vrot.slane %v278_v1, 2  ;;  %v231_v9 = vadd.f32 %v230_v2, %v229_v62 }
 0x1cb   :  { %v238_v11 = vadd.f32 %v237_v4, %v236_v0  ;;  %v286_v12 = vrot.slane %v285_v6, 2 }
 0x1cc   :  { %v232_v14 = vrot.slane %v231_v9, 1  ;;  %v280_v15 = vadd.f32 %v279_v7, %v278_v1 }
 0x1cd   :  { %v239_v16 = vrot.slane %v238_v11, 1  ;;  %v287_v17 = vadd.f32 %v286_v12, %v285_v6 }
 0x1ce   :  { %v233_v18 = vadd.f32 %v232_v14, %v231_v9  ;;  %v281_v19 = vrot.slane %v280_v15, 1 }
 0x1cf   :  { %v240_v20 = vadd.f32 %v239_v16, %v238_v11  ;;  %v288_v21 = vrot.slane %v287_v17, 1 }
 0x1d0   :  { %v242_v22 = vmul.f32 0.25, %v233_v18  ;;  %v282_v23 = vadd.f32 %v281_v19, %v280_v15 }
 0x1d1   :  { %v243_v24 = vmul.f32 0.25, %v240_v20  ;;  %v289_v25 = vadd.f32 %v288_v21, %v287_v17 }
 0x1d2   :  { %v244_v26 = vsub.f32 %v1152_v51, %v242_v22  ;;  %v290_v27 = vmul.f32 0.25, %v282_v23 }
 0x1d3   :  { %v245_v28 = vsub.f32 %v1154_v52, %v243_v24  ;;  %v291_v29 = vmul.f32 0.25, %v289_v25 }
 0x1d4   :  { %v246_v30 = vmul.f32 %v244_v26, %v244_v26  ;;  %v292_v31 = vsub.f32 %v1152_v51, %v290_v27 }
 0x1d5   :  { %v247_v32 = vmul.f32 %v245_v28, %v245_v28  ;;  %v293_v33 = vsub.f32 %v1154_v52, %v291_v29 }
 0x1d6   :  { %v248_v37 = vsel %vm226_vm2, %v246_v30, 0.0  ;;  %v294_v38 = vmul.f32 %v292_v31, %v292_v31 }
 0x1d7   :  { %v255_v39 = vsel %vm226_vm2, %v247_v32, 0.0  ;;  %v249_v40 = vrot.slane %v248_v37, 4  ;;  %v295_v42 = vmul.f32 %v293_v33, %v293_v33 }
 0x1d8   :  { %v256_v44 = vrot.slane %v255_v39, 4  ;;  %v298_v45 = vrot.slane %v294_v38, 4 }
 0x1d9   :  { %v250_v46 = vadd.f32 %v249_v40, %v248_v37  ;;  %v299_v47 = vrot.slane %v295_v42, 4 }
 0x1da   :  { %v257_v48 = vadd.f32 %v256_v44, %v255_v39  ;;  %v302_v49 = vsel %vm226_vm2, %v298_v45, 0.0  ;;  %v1197_v44 = vld [vmem:[%s1390_s2 + $0x68] sm:$0xff] }
 0x1db   :  { %v251_v50 = vrot.slane %v250_v46, 2  ;;  %v309_v53 = vsel %vm226_vm2, %v299_v47, 0.0  ;;  %v303_v54 = vrot.slane %v302_v49, 4  ;;  %v1038_v47 = vmov 3  }
 0x1dc   :  { %v258_v55 = vrot.slane %v257_v48, 2  ;;  %v310_v56 = vrot.slane %v309_v53, 4 }
 0x1dd   :  { %v252_v57 = vadd.f32 %v251_v50, %v250_v46  ;;  %v304_v58 = vadd.f32 %v303_v54, %v302_v49  ;;  %v542_v50 = vlaneseq }
 0x1de   :  { %v259_v59 = vadd.f32 %v258_v55, %v257_v48  ;;  %v311_v60 = vadd.f32 %v310_v56, %v309_v53 }
 0x1df   :  { %v253_v61 = vrot.slane %v252_v57, 1  ;;  %v305_v62 = vrot.slane %v304_v58, 2  ;;  %v551_v54 = vshrl.u32 %v542_v50, 7 }
 0x1e0   :  { %v260_v63 = vrot.slane %v259_v59, 1  ;;  %v312_v0 = vrot.slane %v311_v60, 2 }
 0x1e1   :  { %v254_v1 = vadd.f32 %v253_v61, %v252_v57  ;;  %v306_v2 = vadd.f32 %v305_v62, %v304_v58  ;;  %v1227_v57 = vand.u32 127, %v542_v50  ;;  %v1229_v58 = vsub.s32 0, %v551_v54 }
 0x1e2   :  { %v261_v4 = vadd.f32 %v260_v63, %v259_v59  ;;  %v313_v6 = vadd.f32 %v312_v0, %v311_v60  ;;  %v1231_v59 = vsub.s32 1, %v551_v54  ;;  %v527_v60 = vld [vmem:[%s1391_s3] ss:$4 sm:$0x3] }
 0x1e3   :  { %v262_v7 = vmul.f32 0.25, %v254_v1  ;;  %v307_v9 = vrot.slane %v306_v2, 1  ;;  %vm544_vm4 = vcmp.lt.s32.totalorder %v1227_v57, 1  ;;  %v939_v63 = vld [vmem:[%s1391_s3 + $0x1] ss:$4 sm:$0x3] }
 0x1e4   :  { %v263_v11 = vmul.f32 0.25, %v261_v4  ;;  %v314_v12 = vrot.slane %v313_v6, 1  ;;  %v557_v62 = vrot.slane %v527_v60, %v1231_v59  ;;  %vm572_vm5 = vcmp.lt.s32.totalorder %v1227_v57, 127 }
 0x1e5   :  { %v264_v14 = vadd.f32 1e-06, %v262_v7  ;;  %v308_v15 = vadd.f32 %v307_v9, %v306_v2  ;;  %v581_v9 = vrot.slane %v939_v63, %v1229_v58  ;;  %vm690_vm6 = vcmp.lt.s32.totalorder %v1227_v57, 16 }
 0x1e6   :  { %v265_v16 = vadd.f32 1e-06, %v263_v11  ;;  %v315_v17 = vadd.f32 %v314_v12, %v313_v6  ;;  %v585_v11 = vrot.slane %v939_v63, %v1231_v59  ;;  %vm766_vm7 = vcmp.lt.s32.totalorder %v1227_v57, 112 }
 0x1e7   :  { %992 = vrsqrt.f32 %v264_v14  ;;  %v316_v18 = vmul.f32 0.25, %v308_v15 }
 0x1e8   :  { %994 = vrsqrt.f32 %v265_v16  ;;  %v317_v19 = vmul.f32 0.25, %v315_v17 }
 0x1e9   :  { %v318_v20 = vadd.f32 1e-06, %v316_v18 }
 0x1ea   :  { %v319_v21 = vadd.f32 1e-06, %v317_v19 }
 0x1eb   :  { %996 = vrsqrt.f32 %v318_v20 }
 0x1ec   :  { %998 = vrsqrt.f32 %v319_v21 }
 0x1f1   :  { %v993_v22 = vpop.eup %992 }
 0x1f2   :  { %v995_v23 = vpop.eup %994  ;;  %v268_v25 = vmul.f32 %v993_v22, %v244_v26  ;;  %v429_v26 = vpop.permute.xlu0 %428 }
 0x1f3   :  { %v269_v24 = vmul.f32 %v995_v23, %v245_v28  ;;  %v1035_v28 = vmov 8  }
 0x1f4   :  { %977 = vset.pattern.permute.xlu0 %v1035_v28 }
 0x1f5   :  { %v997_v27 = vpop.eup %996  ;;  %931 = vmatprep.subr.msk.mxu0 %vm226_vm2, %v269_v24 }
 0x1f6   :  { %v999_v29 = vpop.eup %998  ;;  %932 = vmatpush1.msk.msra.mxu0 %vm226_vm2, %v268_v25  ;;  %v322_v30 = vmul.f32 %v997_v27, %v292_v31  ;;  %v331_v31 = vpop.permute.xlu0 %330 }
 0x1f7   :  { %933 = vmatmul.mubr.msk.f32.vlgmr.msra.gmra.mrb[0].mxu0 %vm338_vm3, %v1097_v8  ;;  %v323_v32 = vmul.f32 %v999_v29, %v293_v33  ;;  %v431_v8 = vpop.permute.xlu1 %430 }
 0x1f8   :  { %421 = vmatprep.mubr.f32.mxu0 %v1028_v3  ;;  %v434_v38 = vrot.slane %v322_v30, 4 }
 0x1f9   :  { %v435_v37 = vrot.slane %v323_v32, 4 }
 0x1fa   :  { %v640_v53 = vpop.permute.xlu0 %639 }
 0x1fb   :  { %934 = vmatmul.mubr.msk.f32.gmra.mrb[2].mxu0 %vm338_vm3, %v1119_v13  ;;  %935 = vmatprep.subr.msk.mxu0 %vm226_vm2, %v435_v37  ;;  %v336_v45 = vpop.permute.xlu1 %335 }
 0x1fc   :  { %936 = vmatpush1.msk.msra.mxu0 %vm226_vm2, %v434_v38  ;;  %508 = vmatprep.mubr.f32.mxu0 %v1028_v3  ;;  %v790_v38 = vld [vmem:[%s1390_s2 + $0x70] sm:$0xff] }
 0x1fe   :  { %v668_v56 = vpop.permute.xlu0 %667 }
 0x1ff   :  { %937 = vmatmul.mubr.msk.f32.vlgmr.msra.gmra.mrb[0].mxu0 %vm338_vm3, %v429_v26 }
 0x200   :  { %514 = vmatprep.mubr.f32.mxu0 %v1028_v3 }
 0x203   :  { %938 = vmatmul.mubr.msk.f32.gmra.mrb[2].mxu0 %vm338_vm3, %v431_v8 }
 0x2d2   :  { %v510_v33 = vpop.f32.mrb[0].mxu0 }
 0x2d3   :  { %v1185_v39 = vadd.f32 %v510_v33, %v331_v31  ;;  %v512_v13 = vpop.f32.mrb[1].mxu0 }
 0x2d4   :  { %v1190_v42 = vadd.f32 %v512_v13, %v331_v31 }
 0x2d5   :  { %564 = vrot.lane.b32.xlu1 %v1185_v39, %s1036_s0  ;;  %534 = vrot.lane.b32.xlu0 %v1185_v39, %s1037_s1 }
 0x2d6   :  { %v516_v40 = vpop.f32.mrb[2].mxu0 }
 0x2d7   :  { %v518_v3 = vpop.f32.mrb[3].mxu0  ;;  %v1212_v48 = vadd.f32 %v516_v40, %v336_v45 }
 0x2d8   :  { %v1206_v46 = vadd.f32 %v518_v3, %v336_v45 }
 0x2d9   :  { %743 = vperm.xlu0 %977, %v1107_v10   ;;  %538 = vrot.lane.b32.xlu1 %v1190_v42, %s1037_s1 }
 0x2dd   :  { %978 = vset.pattern.permute.xlu0 %v1029_v5  ;;  %568 = vrot.lane.b32.xlu1 %v1190_v42, %s1036_s0 }
 0x2de   :  { %643 = vperm.xlu0 %978, %v1197_v44  }
 0x2e1   :  { %655 = vperm.xlu1 %979, %v1197_v44  }
 0x2e2   :  { %981 = vset.pattern.permute.xlu0 %v1033_v35  ;;  %v1040_v35 = vmov 5  }
 0x2e3   :  { %719 = vperm.xlu0 %981, %v1197_v44  }
 0x2e5   :  { %980 = vset.pattern.permute.xlu1 %v1032_v34  ;;  %v1039_v34 = vmov 4  }
 0x2e6   :  { %671 = vperm.xlu1 %980, %v1197_v44  }
 0x2e7   :  { %540 = vrot.lane.b32.xlu0 %v1206_v46, %s1037_s1 }
 0x2e8   :  { %984 = vset.pattern.permute.xlu0 %v1038_v47 }
 0x2ea   :  { %982 = vset.pattern.permute.xlu1 %v1034_v36  ;;  %v652_v36 = vpop.permute.xlu1 %651 }
 0x2eb   :  { %731 = vperm.xlu1 %982, %v1197_v44   ;;  %566 = vrot.lane.b32.xlu0 %v1212_v48, %s1036_s0  ;;  %v659_v20 = vmul.f32 %v1190_v42, %v652_v36  ;;  %v658_v21 = vmul.f32 %v1185_v39, %v652_v36 }
 0x2ee   :  { %v716_v49 = vpop.permute.xlu1 %715 }
 0x2ef   :  { %983 = vset.pattern.permute.xlu1 %v1035_v28  ;;  %594 = vperm.xlu0 %984, %v1107_v10  }
 0x2f0   :  { %747 = vperm.xlu1 %983, %v1197_v44  }
 0x2f2   :  { %v728_v55 = vpop.permute.xlu1 %727 }
 0x2f3   :  { %987 = vset.pattern.permute.xlu0 %v1029_v5  ;;  %v734_v32 = vmul.f32 %v1185_v39, %v728_v55  ;;  %v735_v31 = vmul.f32 %v1190_v42, %v728_v55 }
 0x2f4   :  { %536 = vrot.lane.b32.xlu1 %v1212_v48, %s1037_s1 }
 0x2f5   :  { %985 = vset.pattern.permute.xlu1 %v1039_v34 }
 0x2f8   :  { %570 = vrot.lane.b32.xlu1 %v1206_v46, %s1036_s0 }
 0x2fc   :  { %607 = vperm.xlu1 %985, %v1107_v10  }
 0x300   :  { %986 = vset.pattern.permute.xlu1 %v1040_v35 }
 0x301   :  { %623 = vperm.xlu1 %986, %v1107_v10   ;;  %v1238_v10 = vrot.slane %v527_v60, %v1229_v58 }
 0x305   :  { %989 = vset.pattern.permute.xlu1 %v1039_v34 }
 0x347   :  { %v565_v61 = vpop.permute.xlu1 %564  ;;  %v535_v0 = vpop.permute.xlu0 %534 }
 0x34b   :  { %v539_v1 = vpop.permute.xlu1 %538 }
 0x34c   :  { %v545_v2 = vsel %vm544_vm4, %v535_v0, %v539_v1  ;;  %v547_v4 = vsel %vm544_vm4, %v539_v1, %v535_v0 }
 0x34d   :  { %v1250_v6 = vmul.f32 %v1238_v10, %v547_v4  ;;  %v1252_v7 = vmul.f32 %v557_v62, %v545_v2 }
 0x34f   :  { %v646_v12 = vmul.f32 %v640_v53, %v1250_v6  ;;  %v647_v14 = vmul.f32 %v640_v53, %v1252_v7  ;;  %v569_v15 = vpop.permute.xlu1 %568  ;;  %v722_v27 = vmul.f32 %v716_v49, %v1250_v6  ;;  %v723_v26 = vmul.f32 %v716_v49, %v1252_v7 }
 0x350   :  { %v573_v16 = vsel %vm572_vm5, %v565_v61, %v569_v15  ;;  %v575_v17 = vsel %vm572_vm5, %v569_v15, %v565_v61 }
 0x351   :  { %v1262_v18 = vmul.f32 %v581_v9, %v573_v16  ;;  %v1264_v19 = vmul.f32 %v585_v11, %v575_v17  ;;  %v663_v22 = vadd.f32 %v659_v20, %v647_v14  ;;  %v662_v24 = vadd.f32 %v658_v21, %v646_v12 }
 0x352   :  { %v738_v8 = vadd.f32 %v734_v32, %v722_v27  ;;  %v739_v40 = vadd.f32 %v735_v31, %v723_v26 }
 0x353   :  { %v675_v23 = vmul.f32 %v668_v56, %v1264_v19  ;;  %v674_v25 = vmul.f32 %v668_v56, %v1262_v18 }
 0x355   :  { %v679_v29 = vadd.f32 %v675_v23, %v663_v22  ;;  %v678_v30 = vadd.f32 %v674_v25, %v662_v24 }
 0x357   :  { %686 = vrot.lane.b32.xlu1 %v679_v29, %s1041_s29  ;;  %682 = vrot.lane.b32.xlu0 %v678_v30, %s1041_s29 }
 0x358   :  { %v744_v37 = vpop.permute.xlu0 %743 }
 0x359   :  { %v750_v28 = vmul.f32 %v744_v37, %v1262_v18  ;;  %v751_v33 = vmul.f32 %v744_v37, %v1264_v19 }
 0x35b   :  { %v754_v13 = vadd.f32 %v750_v28, %v738_v8  ;;  %794 = vperm.xlu0 %987, %v790_v38   ;;  %v755_v3 = vadd.f32 %v751_v33, %v739_v40  ;;  %v827_v40 = vld [vmem:[%s1390_s2 + $0x88] sm:$0xff] }
 0x35d   :  { %758 = vrot.lane.b32.xlu1 %v754_v13, %s1042_s6  ;;  %v644_v34 = vpop.permute.xlu0 %643 }
 0x35f   :  { %988 = vset.pattern.permute.xlu0 %v1038_v47 }
 0x360   :  { %v656_v45 = vpop.permute.xlu1 %655  ;;  %599 = vperm.xlu0 %988, %v1197_v44  }
 0x361   :  { %762 = vrot.lane.b32.xlu1 %v755_v3, %s1042_s6  ;;  %v660_v2 = vmul.f32 %v1212_v48, %v656_v45  ;;  %v661_v4 = vmul.f32 %v1206_v46, %v656_v45 }
 0x362   :  { %v720_v49 = vpop.permute.xlu0 %719 }
 0x364   :  { %991 = vset.pattern.permute.xlu0 %v1029_v5 }
 0x365   :  { %v672_v36 = vpop.permute.xlu1 %671  ;;  %611 = vperm.xlu1 %989, %v1197_v44  }
 0x366   :  { %v541_v54 = vpop.permute.xlu0 %540 }
 0x369   :  { %990 = vset.pattern.permute.xlu1 %v1040_v35 }
 0x36a   :  { %v732_v50 = vpop.permute.xlu1 %731  ;;  %627 = vperm.xlu1 %990, %v1197_v44   ;;  %v567_v61 = vpop.permute.xlu0 %566 }
 0x36b   :  { %v736_v21 = vmul.f32 %v1212_v48, %v732_v50  ;;  %v737_v37 = vmul.f32 %v1206_v46, %v732_v50 }
 0x36e   :  { %v595_v22 = vpop.permute.xlu0 %594 }
 0x36f   :  { %v748_v53 = vpop.permute.xlu1 %747  ;;  %v602_v29 = vmul.f32 %v595_v22, %v1250_v6  ;;  %v603_v30 = vmul.f32 %v595_v22, %v1252_v7 }
 0x373   :  { %v537_v47 = vpop.permute.xlu1 %536 }
 0x374   :  { %v546_v55 = vsel %vm544_vm4, %v537_v47, %v541_v54  ;;  %v548_v56 = vsel %vm544_vm4, %v541_v54, %v537_v47 }
 0x375   :  { %v1294_v5 = vmul.f32 %v1238_v10, %v548_v56  ;;  %v1296_v60 = vmul.f32 %v557_v62, %v546_v55 }
 0x377   :  { %v648_v35 = vmul.f32 %v644_v34, %v1294_v5  ;;  %v649_v63 = vmul.f32 %v644_v34, %v1296_v60  ;;  %v571_v44 = vpop.permute.xlu1 %570  ;;  %v724_v12 = vmul.f32 %v720_v49, %v1294_v5  ;;  %v725_v32 = vmul.f32 %v720_v49, %v1296_v60  ;;  %v941_v34 = vld [vmem:[%s1391_s3 + $0x3] ss:$4 sm:$0x3] }
 0x378   :  { %v574_v0 = vsel %vm572_vm5, %v567_v61, %v571_v44  ;;  %v576_v1 = vsel %vm572_vm5, %v571_v44, %v567_v61  ;;  %v775_v47 = vrot.slane %v941_v34, %v1229_v58  ;;  %v779_v55 = vrot.slane %v941_v34, %v1231_v59 }
 0x379   :  { %v1306_v10 = vmul.f32 %v581_v9, %v574_v0  ;;  %v1308_v62 = vmul.f32 %v585_v11, %v576_v1  ;;  %v664_v15 = vadd.f32 %v660_v2, %v648_v35  ;;  %v665_v17 = vadd.f32 %v661_v4, %v649_v63 }
 0x37a   :  { %v740_v27 = vadd.f32 %v736_v21, %v724_v12  ;;  %v741_v13 = vadd.f32 %v737_v37, %v725_v32 }
 0x37b   :  { %v608_v14 = vpop.permute.xlu1 %607  ;;  %v676_v16 = vmul.f32 %v672_v36, %v1306_v10  ;;  %v677_v20 = vmul.f32 %v672_v36, %v1308_v62  ;;  %v752_v23 = vmul.f32 %v748_v53, %v1306_v10  ;;  %v753_v26 = vmul.f32 %v748_v53, %v1308_v62 }
 0x37c   :  { %v614_v24 = vmul.f32 %v1185_v39, %v608_v14  ;;  %v615_v9 = vmul.f32 %v1190_v42, %v608_v14  ;;  %v791_v39 = vld [vmem:[%s1390_s2 + $0x78] sm:$0xff] }
 0x37d   :  { %v680_v11 = vadd.f32 %v676_v16, %v664_v15  ;;  %v681_v25 = vadd.f32 %v677_v20, %v665_v17  ;;  %v756_v42 = vadd.f32 %v752_v23, %v740_v27  ;;  %v757_v3 = vadd.f32 %v753_v26, %v741_v13 }
 0x37e   :  { %v618_v8 = vadd.f32 %v614_v24, %v602_v29  ;;  %v619_v6 = vadd.f32 %v615_v9, %v603_v30 }
 0x37f   :  { %684 = vrot.lane.b32.xlu0 %v680_v11, %s1041_s29  ;;  %688 = vrot.lane.b32.xlu1 %v681_v25, %s1041_s29 }
 0x380   :  { %v624_v38 = vpop.permute.xlu1 %623 }
 0x381   :  { %v630_v7 = vmul.f32 %v624_v38, %v1262_v18  ;;  %v631_v28 = vmul.f32 %v624_v38, %v1264_v19  ;;  %v940_v18 = vld [vmem:[%s1391_s3 + $0x2] ss:$4 sm:$0x3] }
 0x382   :  { %v699_v36 = vrot.slane %v940_v18, %v1229_v58  ;;  %v703_v49 = vrot.slane %v940_v18, %v1231_v59 }
 0x383   :  { %v634_v31 = vadd.f32 %v630_v7, %v618_v8  ;;  %v635_v33 = vadd.f32 %v631_v28, %v619_v6  ;;  %799 = vperm.xlu0 %991, %v791_v39   ;;  %760 = vrot.lane.b32.xlu1 %v756_v42, %s1042_s6 }
 0x387   :  { %830 = vperm.xlu0 %991, %v827_v40   ;;  %764 = vrot.lane.b32.xlu1 %v757_v3, %s1042_s6 }
 0x3c9   :  { %v687_v45 = vpop.permute.xlu1 %686  ;;  %v683_v19 = vpop.permute.xlu0 %682 }
 0x3ca   :  { %v691_v53 = vsel %vm690_vm6, %v683_v19, %v687_v45  ;;  %v693_v54 = vsel %vm690_vm6, %v687_v45, %v683_v19 }
 0x3cb   :  { %v706_v56 = vmul.f32 %v699_v36, %v693_v54  ;;  %v707_v61 = vmul.f32 %v703_v49, %v691_v53 }
 0x3cd   :  { %v710_v2 = vadd.f32 %v706_v56, %v634_v31  ;;  %v711_v4 = vadd.f32 %v707_v61, %v635_v33 }
 0x3cf   :  { %v759_v50 = vpop.permute.xlu1 %758 }
 0x3d3   :  { %v763_v35 = vpop.permute.xlu1 %762 }
 0x3d4   :  { %v767_v63 = vsel %vm766_vm7, %v759_v50, %v763_v35  ;;  %v769_v44 = vsel %vm766_vm7, %v763_v35, %v759_v50 }
 0x3d5   :  { %v782_v0 = vmul.f32 %v775_v47, %v767_v63  ;;  %v783_v1 = vmul.f32 %v779_v55, %v769_v44 }
 0x3d7   :  { %v786_v12 = vadd.f32 %v782_v0, %v710_v2  ;;  %v787_v14 = vadd.f32 %v783_v1, %v711_v4 }
 0x3da   :  { %v795_v15 = vpop.permute.xlu0 %794 }
 0x3db   :  { %v802_v16 = vadd.f32 %v795_v15, %v786_v12  ;;  %v803_v58 = vadd.f32 %v795_v15, %v787_v14 }
 0x3dd   :  { %v808_v17 = vmul.f32 %v802_v16, %v802_v16  ;;  %v809_v59 = vmul.f32 %v803_v58, %v803_v58  ;;  %v806_v56 = vmul.f32 0.5, %v802_v16  ;;  %v807_v61 = vmul.f32 0.5, %v803_v58 }
 0x3df   :  { %v810_v20 = vmul.f32 %v808_v17, %v802_v16  ;;  %v811_v21 = vmul.f32 %v809_v59, %v803_v58  ;;  %v600_v30 = vpop.permute.xlu0 %599 }
 0x3e0   :  { %v604_v6 = vmul.f32 %v600_v30, %v1294_v5  ;;  %v605_v7 = vmul.f32 %v600_v30, %v1296_v60 }
 0x3e1   :  { %v812_v22 = vmul.f32 0.044715, %v810_v20  ;;  %v813_v23 = vmul.f32 0.044715, %v811_v21 }
 0x3e3   :  { %v814_v9 = vadd.f32 %v812_v22, %v802_v16  ;;  %v815_v11 = vadd.f32 %v813_v23, %v803_v58 }
 0x3e4   :  { %v612_v24 = vpop.permute.xlu1 %611 }
 0x3e5   :  { %v816_v25 = vmul.f32 0.7978846, %v814_v9  ;;  %v817_v29 = vmul.f32 0.7978846, %v815_v11  ;;  %v616_v39 = vmul.f32 %v1212_v48, %v612_v24  ;;  %v617_v42 = vmul.f32 %v1206_v46, %v612_v24 }
 0x3e7   :  { %1000 = vtanh.f32 %v816_v25  ;;  %v620_v40 = vadd.f32 %v616_v39, %v604_v6  ;;  %v621_v3 = vadd.f32 %v617_v42, %v605_v7 }
 0x3e8   :  { %1002 = vtanh.f32 %v817_v29 }
 0x3e9   :  { %v628_v27 = vpop.permute.xlu1 %627 }
 0x3ea   :  { %v632_v28 = vmul.f32 %v628_v27, %v1306_v10  ;;  %v633_v31 = vmul.f32 %v628_v27, %v1308_v62 }
 0x3ec   :  { %v636_v5 = vadd.f32 %v632_v28, %v620_v40  ;;  %v637_v34 = vadd.f32 %v633_v31, %v621_v3 }
 0x3f1   :  { %v689_v32 = vpop.permute.xlu1 %688  ;;  %v685_v37 = vpop.permute.xlu0 %684 }
 0x3f2   :  { %v692_v26 = vsel %vm690_vm6, %v685_v37, %v689_v32  ;;  %v694_v8 = vsel %vm690_vm6, %v689_v32, %v685_v37  ;;  %v1001_v13 = vpop.eup %1000 }
 0x3f3   :  { %v708_v45 = vmul.f32 %v699_v36, %v694_v8  ;;  %v709_v18 = vmul.f32 %v703_v49, %v692_v26  ;;  %v1003_v19 = vpop.eup %1002  ;;  %v820_v62 = vadd.f32 1.0, %v1001_v13 }
 0x3f4   :  { %v821_v54 = vadd.f32 1.0, %v1003_v19 }
 0x3f5   :  { %v761_v38 = vpop.permute.xlu1 %760  ;;  %v712_v10 = vadd.f32 %v708_v45, %v636_v5  ;;  %v713_v53 = vadd.f32 %v709_v18, %v637_v34  ;;  %v822_v44 = vmul.f32 %v820_v62, %v806_v56 }
 0x3f6   :  { %v823_v0 = vmul.f32 %v821_v54, %v807_v61 }
 0x3f9   :  { %v765_v33 = vpop.permute.xlu1 %764 }
 0x3fa   :  { %v768_v48 = vsel %vm766_vm7, %v761_v38, %v765_v33  ;;  %v770_v46 = vsel %vm766_vm7, %v765_v33, %v761_v38 }
 0x3fb   :  { %v784_v60 = vmul.f32 %v775_v47, %v768_v48  ;;  %v785_v50 = vmul.f32 %v779_v55, %v770_v46  ;;  %v826_v47 = vld [vmem:[%s1390_s2 + $0x80] sm:$0xff]  ;;  %s1004_s2 = scalar_lea.vmem %s920_s17, 256 }
 0x3fc   :  { %p1005_p0 = scmp.ne.s32.totalorder %s920_s17, %s1004_s2  ;;  %p1010_p2 = scmp.lt.s32.totalorder %s1004_s2, %s1004_s2 }
 0x3fd   :  { %v788_v35 = vadd.f32 %v784_v60, %v712_v10  ;;  %v789_v63 = vadd.f32 %v785_v50, %v713_v53 }
 0x3fe   :  { %p1011_p3 = por %p1010_p2, %p1009_p1 }
 0x400   :  { %p1012_p4 = pnand %p1011_p3, %p1005_p0 }
 0x402   :  { %v800_v57 = vpop.permute.xlu0 %799 }
 0x403   :  { %v804_v1 = vadd.f32 %v800_v57, %v788_v35  ;;  %v805_v2 = vadd.f32 %v800_v57, %v789_v63 }
 0x405   :  { %v824_v36 = vmul.f32 %v822_v44, %v804_v1  ;;  %v825_v49 = vmul.f32 %v823_v0, %v805_v2 }
 0x406   :  { %v831_v55 = vpop.permute.xlu0 %830 }
 0x407   :  { %836 = vmatprep.subr.mxu1 %v825_v49 }
 0x408   :  { %837 = vmatpush1.msra.mxu1 %v824_v36 }
 0x409   :  { %942 = vmatmul.mubr.msk.f32.vlgmr.msra.gmra.mrb[8].mxu1 %vm36_vm0, %v826_v47 }
 0x4dc   :  { %v902_v4 = vpop.f32.mrb[8].mxu1 }
 0x4dd   :  { %v903_v12 = vadd.f32 %v902_v4, %v831_v55  ;;  %v904_v14 = vpop.f32.mrb[9].mxu1 }
 0x4de   :  { %v905_v15 = vadd.f32 %v904_v14, %v831_v55 }
 0x4df   :  { %v907_v16 = vadd.f32 %v903_v12, %v1143_v41 }
 0x4e0   :  { %v908_v58 = vadd.f32 %v905_v15, %v1148_v43 }
 0x4e1   :  { %v909_v17 = vadd.f32 %v907_v16, %v1152_v51 }
 0x4e2   :  { %v910_v59 = vadd.f32 %v908_v58, %v1154_v52 }
 0x4e3   :  { %911 = vst [vmem:[#allocation2] sm:$0xff] %v909_v17 }
 0x4e4   :  { %912 = vst [vmem:[#allocation2 + $0x8] sm:$0xff] %v910_v59 }
 0x4e5   :  { %1015 = shalt.err (!%p1012_p4)
}
 0x4e6   :  { %s1016_s20 = scalar_lea.hbm %s1392_s4, 256 }
 0x4e7   :  { %p1017_p5 = scmp.ne.s32.totalorder %s1392_s4, %s1016_s20  ;;  %p1020_p6 = scmp.lt.u32.totalorder %s1016_s20, %s1392_s4 }
 0x4e9   :  { %p1022_p7 = pnand %p1020_p6, %p1017_p5 }
 0x4eb   :  { %1025 = shalt.err (!%p1022_p7)
}
 0x4ec   :  { %922 = dma.vmem_to_hbm [thread:$0]  %s920_s17, 256, %s1392_s4, [#allocation3]  }
 0x4ed   :  { %1026 = dma.done.wait [#allocation3], 256  }
 0x4ee   :  { %1027 = vsyncadd [#allocation3], 4294967040 }
 0x4ef   :  { %926 = vsyncpa [#allocation3], 1 }

</bundles_post_ra>
